<compile_context>
chip_gen: v6e
topology: v6e:2x2x1
jax: 0.10.0
libtpu: 0.0.40
codegen_flags: <defaults>
</compile_context>

<pallas_src>
import math
import numpy as np
import jax
import jax.numpy as jnp
from jax.experimental import pallas as pl
from jax.experimental.pallas import tpu as pltpu

GEM_P = 3.0     # GeM pooling exponent (deterministic "parameter")
EPS = 1e-6      # Rpool / L2N / GeM eps


def compute_regions(H, W, L=3):
    """Replicates roipool's region enumeration (static, pure Python).

    Returns an (R, 4) int32 table of (h0, w0, hsize, wsize) region windows.
    """
    ovr = 0.4
    steps = np.array([2, 3, 4, 5, 6, 7], dtype=np.float64)
    w = min(W, H)
    b = (max(H, W) - w) / (steps - 1)
    idx = int(np.argmin(np.abs((w * w - w * b) / float(w * w) - ovr)))
    Wd, Hd = 0, 0
    if H < W:
        Wd = idx + 1
    elif H > W:
        Hd = idx + 1

    regions = [(0, 0, H, W)]  # whole feature map first (matches rpool(x))
    for l in range(1, L + 1):
        wl = math.floor(2 * w / (l + 1))
        wl2 = math.floor(wl / 2 - 1)
        b = 0.0 if (l + Wd == 1) else (W - wl) / (l + Wd - 1)
        cenW = [int(math.floor(wl2 + i * b)) - wl2 for i in range(l - 1 + Wd + 1)]
        b = 0.0 if (l + Hd == 1) else (H - wl) / (l + Hd - 1)
        cenH = [int(math.floor(wl2 + i * b)) - wl2 for i in range(l - 1 + Hd + 1)]
        for i_ in cenH:
            for j_ in cenW:
                if wl == 0:
                    continue
                regions.append((i_, j_, wl, wl))
    return np.asarray(regions, dtype=np.int32)


def build_region_weights(H, W, L=3):
    """Static (R, H*W) f32 weight matrix: row r = 1/(hs*ws) inside region r.

    Folding the 1/area mean into the weights makes the regional GeM pool
    `mean(x^p over region)` a single matmul row, and removes the per-region
    mask / select / reductions from the kernel.
    """
    regions = compute_regions(H, W, L)
    R = int(regions.shape[0])
    wmat = np.zeros((R, H, W), dtype=np.float32)
    for r, (h0, w0, hs, ws) in enumerate(regions):
        # Guard the correctness concern: regions must be in-bounds and non-empty
        # so area == clipped element count and pooled > 0.
        assert hs > 0 and ws > 0, (hs, ws)
        assert 0 <= h0 and h0 + hs <= H and 0 <= w0 and w0 + ws <= W, (h0, w0, hs, ws)
        wmat[r, h0:h0 + hs, w0:w0 + ws] = 1.0 / float(hs * ws)
    return wmat.reshape(R, H * W)


def rpool_kernel(wreg_ref, x_ref, o_ref):
    """One grid step = one image. All R regions pooled by a single MXU matmul.

    wreg_ref : VMEM (R, H*W) f32 region weights (1/area inside region, else 0)
    x_ref    : VMEM (1, H*W, C) feature map block for this image
    o_ref    : VMEM (1, 1, C) aggregated, L2-normalized descriptor
    """
    x = x_ref[0].astype(jnp.float32)                 # (HW, C), channels on lanes
    xc = jnp.maximum(x, EPS)
    x3 = xc * xc * xc                                # GeM p = 3, computed once

    # All regional means of x^p in one (R, HW) x (HW, C) MXU matmul.
    pooled = jnp.dot(
        wreg_ref[...], x3,
        preferred_element_type=jnp.float32,
        precision=jax.lax.Precision.HIGHEST,         # full-f32 contraction
    )                                                # (R, C), strictly > 0

    # ^(1/p) via EUP transcendentals (pooled >= EPS^p > 0).
    pooled = jnp.exp(jnp.log(pooled) * (1.0 / GEM_P))

    # Per-region l2n over channels (dim=1 of the (N*R, C, 1, 1) PyTorch view).
    nrm = jnp.sqrt(jnp.sum(pooled * pooled, axis=1, keepdims=True))   # (R, 1)
    vecs = pooled * pl.reciprocal(nrm + EPS, approx=True)

    # Aggregate over regions, then final l2n.
    agg = jnp.sum(vecs, axis=0, keepdims=True)                        # (1, C)
    nrm2 = jnp.sqrt(jnp.sum(agg * agg, axis=1, keepdims=True))
    out = agg * pl.reciprocal(nrm2 + EPS, approx=True)

    o_ref[...] = out.reshape(o_ref.shape).astype(o_ref.dtype)


def rpool_forward(x_nchw, L=3):
    """Rpool.forward(x, aggregate=True) with rpool = GeM(p=3), whiten = None."""
    N, C, H, W = x_nchw.shape
    wreg = jnp.asarray(build_region_weights(H, W, L))   # (R, H*W), static
    R, HW = int(wreg.shape[0]), int(wreg.shape[1])

    # NCHW -> (N, H*W, C): channels on the lane axis, spatial on the
    # contraction axis of the region matmul.  (bf16 inputs also accepted; the
    # kernel upcasts to f32 for the clamp/cube/matmul.)
    x_flat = jnp.transpose(x_nchw, (0, 2, 3, 1)).reshape(N, HW, C)

    out = pl.pallas_call(
        rpool_kernel,
        out_shape=jax.ShapeDtypeStruct((N, 1, C), x_nchw.dtype),
        grid_spec=pltpu.PrefetchScalarGridSpec(
            num_scalar_prefetch=0,
            grid=(N,),  # one image per step -> bounded VMEM, parallel over TCs
            in_specs=[
                pl.BlockSpec((R, HW), lambda n: (0, 0)),        # weights: constant block
                pl.BlockSpec((1, HW, C), lambda n: (n, 0, 0)),  # per-image feature map
            ],
            out_specs=pl.BlockSpec((1, 1, C), lambda n: (n, 0, 0)),
        ),
        compiler_params=pltpu.CompilerParams(
            dimension_semantics=("parallel",),         # v7x: shard batch over 2 TCs
            vmem_limit_bytes=48 * 1024 * 1024,         # headroom for production C/H/W
        ),
    )(wreg, x_flat)
    # TODO(synk): `whiten` is None by default; a Linear whitener would add one
    # (N*R, C) x (C, C) matmul + l2n inside the kernel before aggregation.
    return out.reshape(N, C, 1, 1)


def rpool_reference(x_nchw, L=3):
    """Pure-JAX reference replicating the PyTorch forward (rpool = GeM(p=3))."""
    N, C, H, W = x_nchw.shape
    vecs = []
    for (h0, w0, hs, ws) in compute_regions(H, W, L):
        patch = x_nchw[:, :, h0:h0 + hs, w0:w0 + ws].astype(jnp.float32)
        pooled = jnp.mean(jnp.clip(patch, EPS, None) ** GEM_P, axis=(2, 3)) ** (1.0 / GEM_P)
        nrm = jnp.sqrt(jnp.sum(pooled ** 2, axis=1, keepdims=True))
        vecs.append(pooled / (nrm + EPS))
    agg = sum(vecs)
    nrm = jnp.sqrt(jnp.sum(agg ** 2, axis=1, keepdims=True))
    return (agg / (nrm + EPS)).reshape(N, C, 1, 1).astype(x_nchw.dtype)


if __name__ == "__main__":
    key = jax.random.PRNGKey(0)
    N, C, H, W = 2, 4, 16, 16
    x = jax.random.uniform(key, (N, C, H, W), dtype=jnp.float32)

    out = jax.block_until_ready(rpool_forward(x, L=3))
    ref = jax.block_until_ready(rpool_reference(x, L=3))

    assert out.shape == (N, C, 1, 1), out.shape
    # Tolerance leaves room for the EUP approximate-reciprocal path used for
    # the two L2 normalizations (structural errors would be orders larger).
    np.testing.assert_allclose(np.asarray(out), np.asarray(ref), rtol=5e-3, atol=1e-4)
    print("KERNEL_OK")
</pallas_src>

<mosaic_0001>
module attributes {stable_mosaic.version = 11 : i64} {
  func.func @rpool_kernel(%arg0: i32, %arg1: memref<15x256xf32, #tpu.memory_space<vmem>>, %arg2: memref<1x256x4xf32, #tpu.memory_space<vmem>>, %arg3: memref<1x1x4xf32, #tpu.memory_space<vmem>>) attributes {dimension_semantics = [#tpu.dimension_semantics<parallel>], iteration_bounds = array<i64: 2>, scalar_prefetch = 0 : i64, scratch_operands = 0 : i64, tpu.core_type = #tpu.core_type<tc>, window_params = [{pipeline_mode = #tpu.pipeline_mode<synchronous>, transform_indices = @transform_0, window_bounds = array<i64: 15, 256>}, {transform_indices = @transform_1, window_bounds = array<i64: 1, 256, 4>}, {transform_indices = @transform_2, window_bounds = array<i64: 1, 1, 4>}]} {
    %c0 = arith.constant 0 : index
    %c0_0 = arith.constant 0 : index
    %c0_1 = arith.constant 0 : index
    %0 = vector.load %arg2[%c0, %c0_0, %c0_1] : memref<1x256x4xf32, #tpu.memory_space<vmem>>, vector<1x256x4xf32>
    %1 = vector.shape_cast %0 : vector<1x256x4xf32> to vector<256x4xf32>
    %cst = arith.constant 9.99999997E-7 : f32
    %2 = vector.broadcast %cst : f32 to vector<256x4xf32>
    %3 = arith.maximumf %1, %2 : vector<256x4xf32>
    %4 = arith.mulf %3, %3 : vector<256x4xf32>
    %5 = arith.mulf %4, %3 : vector<256x4xf32>
    %c0_2 = arith.constant 0 : index
    %c0_3 = arith.constant 0 : index
    %6 = vector.load %arg1[%c0_2, %c0_3] : memref<15x256xf32, #tpu.memory_space<vmem>>, vector<15x256xf32>
    %cst_4 = arith.constant dense<0.000000e+00> : vector<15x4xf32>
    %7 = tpu.matmul %6, %5, %cst_4 {dimension_numbers = #tpu.dot_dimension_numbers<[1], [0], [0], [1], [0, 0, 1, 1], [], []>, precision = #tpu.contract_precision<fp32>} : vector<15x256xf32>, vector<256x4xf32>, vector<15x4xf32> -> vector<15x4xf32>
    %8 = math.log %7 : vector<15x4xf32>
    %cst_5 = arith.constant 0.333333343 : f32
    %9 = vector.broadcast %cst_5 : f32 to vector<15x4xf32>
    %10 = arith.mulf %8, %9 : vector<15x4xf32>
    %11 = math.exp %10 : vector<15x4xf32>
    %12 = arith.mulf %11, %11 : vector<15x4xf32>
    %cst_6 = arith.constant dense<0.000000e+00> : vector<15xf32>
    %13 = vector.multi_reduction <add>, %12, %cst_6 [1] : vector<15x4xf32> to vector<15xf32>
    %14 = vector.shape_cast %13 : vector<15xf32> to vector<15x1xf32>
    %15 = math.sqrt %14 : vector<15x1xf32>
    %cst_7 = arith.constant 9.99999997E-7 : f32
    %16 = vector.broadcast %cst_7 : f32 to vector<15x1xf32>
    %17 = arith.addf %15, %16 : vector<15x1xf32>
    %18 = tpu.reciprocal %17 {approx = true} : vector<15x1xf32> -> vector<15x1xf32>
    %19 = vector.broadcast %18 : vector<15x1xf32> to vector<15x4xf32>
    %20 = arith.mulf %11, %19 : vector<15x4xf32>
    %cst_8 = arith.constant dense<0.000000e+00> : vector<4xf32>
    %21 = vector.multi_reduction <add>, %20, %cst_8 [0] : vector<15x4xf32> to vector<4xf32>
    %22 = vector.shape_cast %21 : vector<4xf32> to vector<1x4xf32>
    %23 = arith.mulf %22, %22 : vector<1x4xf32>
    %cst_9 = arith.constant dense<0.000000e+00> : vector<1xf32>
    %24 = vector.multi_reduction <add>, %23, %cst_9 [1] : vector<1x4xf32> to vector<1xf32>
    %25 = vector.shape_cast %24 : vector<1xf32> to vector<1x1xf32>
    %26 = math.sqrt %25 : vector<1x1xf32>
    %cst_10 = arith.constant 9.99999997E-7 : f32
    %27 = vector.broadcast %cst_10 : f32 to vector<1x1xf32>
    %28 = arith.addf %26, %27 : vector<1x1xf32>
    %29 = tpu.reciprocal %28 {approx = true} : vector<1x1xf32> -> vector<1x1xf32>
    %30 = vector.broadcast %29 : vector<1x1xf32> to vector<1x4xf32>
    %31 = arith.mulf %22, %30 : vector<1x4xf32>
    %32 = vector.shape_cast %31 : vector<1x4xf32> to vector<1x1x4xf32>
    %c0_11 = arith.constant 0 : index
    %c0_12 = arith.constant 0 : index
    %c0_13 = arith.constant 0 : index
    %33 = vector.load %arg3[%c0_11, %c0_12, %c0_13] : memref<1x1x4xf32, #tpu.memory_space<vmem>>, vector<1x1x4xf32>
    tpu.vector_store %arg3[%c0_11, %c0_12, %c0_13], %32 {strides = array<i32>} : memref<1x1x4xf32, #tpu.memory_space<vmem>>, vector<1x1x4xf32>,
    return
  }
  func.func @transform_0(%arg0: i32) -> (i32, i32) {
    %c0_i32 = arith.constant 0 : i32
    %c0_i32_0 = arith.constant 0 : i32
    %c0_i32_1 = arith.constant 0 : i32
    return %c0_i32, %c0_i32_0 : i32, i32
  }
  func.func @transform_1(%arg0: i32) -> (i32, i32, i32) {
    %c0_i32 = arith.constant 0 : i32
    %c0_i32_0 = arith.constant 0 : i32
    %c0_i32_1 = arith.constant 0 : i32
    return %arg0, %c0_i32, %c0_i32_0 : i32, i32, i32
  }
  func.func @transform_2(%arg0: i32) -> (i32, i32, i32) {
    %c0_i32 = arith.constant 0 : i32
    %c0_i32_0 = arith.constant 0 : i32
    %c0_i32_1 = arith.constant 0 : i32
    return %arg0, %c0_i32, %c0_i32_0 : i32, i32, i32
  }
}

</mosaic_0001>

<bundles_post_ra>
// kernel: tpu_custom_call.1
= control target key start
LH: loop header
LB: loop body
LE: loop exit
PB: predicated region body
PF: predicated region fallthrough
CT: control target
= control target key end

     0   :  { %7 = vsyncpa [#allocation3], 0  ;;  %s2467_s0 = inlined_call_operand.vmem [shape: f32[15,256], index: 0, kind: input, shape index: {}]   ;;  %s2468_s1 = inlined_call_operand.vmem [shape: f32[2,256,4], index: 1, kind: input, shape index: {}]   ;;  %s2469_s2 = inlined_call_operand.hbm [shape: f32[2,1,4], index: 2, kind: output, shape index: {}]  }
   0x1   :  { %9 = vsyncpa [#allocation3 + $0x1], 0  ;;  %s1699_s9 = smov 0   ;;  %s1701_s10 = smov 0  }
   0x2   :  { %s1703_s11 = smov 0   ;;  %s1705_s12 = smov 0  }
   0x3 LB: > { %s1720_s13 = sadd.s32 4294967295, %s1681_s12   ;;  %s1324_s14 = sadd.s32 4294967294, %s1681_s12   ;;  %s1681_s12 = sphi %s1705_s12, %s2650_s12   ;;  %s1677_s11 = sphi %s1703_s11, %s2649_s11   ;;  %s1673_s10 = sphi %s1701_s10, %s2648_s10   ;;  %s1669_s9 = sphi %s1699_s9, %s2647_s9  }
   0x4   : > { %s1724_s15 = sadd.s32 1, %s1681_s12   ;;  %s69_s16 = sadd.s32 1, %s1677_s11 }
   0x5   : > { %s66_s17 = ssub.s32 %s1681_s12, %s1724_s15  ;;  %p79_p0 = scmp.ne.s32.totalorder %s1677_s11, %s1673_s10 }
   0x6   : > { %p67_p1 = scmp.eq.s32.totalorder %s66_s17, 0  ;;  %p80_p2 = scmp.eq.s32.totalorder %s1720_s13, 1 }
   0x7   : > { %p85_p3 = scmp.ne.s32.totalorder %s1673_s10, %s1669_s9  ;;  %p86_p4 = scmp.eq.s32.totalorder %s1324_s14, 1 }
   0x8   : > { %s1735_s18 = scalar_select %p67_p1, %s1677_s11, %s69_s16  }
   0x9   : > { %p1737_p5 = por %p80_p2, %p79_p0  ;;  %p1741_p6 = por %p86_p4, %p85_p3 }
   0xa   : > { %p1327_p7 = scmp.ge.s32.totalorder %s1681_s12, 1  ;;  %p115_p8 = scmp.lt.s32.totalorder %s1681_s12, 3 }
   0xc   : > { %p116_p9 = pnand %p1327_p7, %p115_p8 }
   0xe   : > { %119 = sbr.rel (%p116_p9) target bundleno = 786 (0x312), region = 28 }
  0x13   : > { %p136_p10 = scmp.lt.s32.totalorder %s1720_s13, 1  ;;  %v270_v0 = vld [vmem:[%s2467_s0 + $0x8] sm:$0xff]  ;;  %v269_v1 = vld [vmem:[%s2467_s0] sm:$0xff]  ;;  %vm1203_vm0 = vcmask 31744   ;;  %vm1207_vm1 = vcmask 30720   ;;  %s134_s6 = sand.u32 1, %s1673_s10  }
  0x14   : > { %v1754_v2 = vand.u32 4294901760, %v270_v0  ;;  %v1756_v3 = vand.u32 4294901760, %v269_v1  ;;  %s1330_s7 = sshll.u32 %s1720_s13, 4  ;;  %s135_s8 = scalar_lea.vmem [#allocation2], %s134_s6  ;;  %vm1254_vm8 = vcmask 24576  }
  0x15   : > { %s137_s25 = scalar_select %p136_p10, %s1720_s13, 1 }
  0x16   : > { %2556 = vst [vmem:[#allocation5_spill] sm:$0xff] %v1754_v2  ;;  %2557 = vst [vmem:[#allocation6_spill] sm:$0xff] %v1756_v3  ;;  %v1760_v4 = vsub.f32 %v270_v0, %v1754_v2  ;;  %v1763_v5 = vsub.f32 %v269_v1, %v1756_v3  ;;  %625 = vmatprep.mubr.f32.mxu1 %v1754_v2  ;;  %s1269_s14 = sshll.u32 %s135_s8, 4  ;;  %s1267_s21 = scalar_lea.hbm %s2469_s2, %s1330_s7  ;;  %s1270_s14 = int_to_ptr.vmem [resolvable:$true] %s1269_s14 }
  0x17   : > { %s1333_s26 = sshll.u32 %s137_s25, 8  ;;  %s1257_s22 = scalar_lea.sflag [#allocation3], %s134_s6 }
  0x18   : > { %2558 = vst [vmem:[#allocation7_spill] sm:$0xff] %v1760_v4  ;;  %2559 = vst [vmem:[#allocation8_spill] sm:$0xff] %v1763_v5  ;;  %s1769_s29 = scalar_lea.vmem %s2468_s1, %s1333_s26  ;;  %v2473_v6 = vand.u32 4294901760, %v1760_v4  ;;  %v2470_v10 = vand.u32 4294901760, %v1763_v5  ;;  %s1621_s23 = scalar_lea.vmem %s1270_s14, 16 }
  0x19   : > { %v172_v7 = vld [vmem:[%s1769_s29 + $0xf8] sm:$0xff]  ;;  %v171_v9 = vld [vmem:[%s1769_s29 + $0xf0] sm:$0xff]  ;;  %v170_v15 = vld [vmem:[%s1769_s29 + $0xe8] sm:$0xff]  ;;  %p1622_p11 = scmp.ne.s32.totalorder %s1270_s14, %s1621_s23  ;;  %s1683_s24 = smov [#allocation2]  }
  0x1a   : > { %v156_v8 = vld [vmem:[%s1769_s29 + $0x78] sm:$0xff]  ;;  %v204_v11 = vmax.f32 %v172_v7, 1e-06  ;;  %v203_v13 = vmax.f32 %v171_v9, 1e-06  ;;  %v155_v14 = vld [vmem:[%s1769_s29 + $0x70] sm:$0xff]  ;;  %v1782_v17 = vsub.f32 %v1760_v4, %v2473_v6  ;;  %v1789_v27 = vsub.f32 %v1763_v5, %v2470_v10 }
  0x1b   : > { %v188_v12 = vmax.f32 %v156_v8, 1e-06  ;;  %v154_v16 = vld [vmem:[%s1769_s29 + $0x68] sm:$0xff]  ;;  %v187_v21 = vmax.f32 %v155_v14, 1e-06  ;;  %v169_v22 = vld [vmem:[%s1769_s29 + $0xe0] sm:$0xff]  ;;  %p1623_p12 = pnand %p1622_p11, %p1737_p5 }
  0x1c   : > { %v236_v18 = vmul.f32 %v204_v11, %v204_v11  ;;  %v235_v20 = vmul.f32 %v203_v13, %v203_v13  ;;  %v153_v23 = vld [vmem:[%s1769_s29 + $0x60] sm:$0xff]  ;;  %v202_v24 = vmax.f32 %v170_v15, 1e-06  ;;  %v186_v25 = vmax.f32 %v154_v16, 1e-06  ;;  %v168_v36 = vld [vmem:[%s1769_s29 + $0xd8] sm:$0xff] }
  0x1d   : > { %v220_v19 = vmul.f32 %v188_v12, %v188_v12  ;;  %v201_v26 = vmax.f32 %v169_v22, 1e-06  ;;  %v219_v31 = vmul.f32 %v187_v21, %v187_v21  ;;  %v185_v35 = vmax.f32 %v153_v23, 1e-06  ;;  %v152_v37 = vld [vmem:[%s1769_s29 + $0x58] sm:$0xff]  ;;  %v167_v46 = vld [vmem:[%s1769_s29 + $0xd0] sm:$0xff]  ;;  %p1624_p13 = pneg %p1623_p12 }
  0x1e   : > { %v268_v28 = vmul.f32 %v236_v18, %v204_v11  ;;  %v267_v30 = vmul.f32 %v235_v20, %v203_v13  ;;  %v234_v32 = vmul.f32 %v202_v24, %v202_v24  ;;  %v218_v33 = vmul.f32 %v186_v25, %v186_v25  ;;  %v151_v51 = vld [vmem:[%s1769_s29 + $0x50] sm:$0xff]  ;;  %v166_v14 = vld [vmem:[%s1769_s29 + $0xc8] sm:$0xff]  ;;  %s1625_s25 = sshll.u32 %s1683_s24, 4  ;;  %s1626_s25 = int_to_ptr.vmem [resolvable:$false] %s1625_s25 }
  0x1f   : > { %v252_v29 = vmul.f32 %v220_v19, %v188_v12  ;;  %v233_v34 = vmul.f32 %v201_v26, %v201_v26  ;;  %v251_v41 = vmul.f32 %v219_v31, %v187_v21  ;;  %v217_v45 = vmul.f32 %v185_v35, %v185_v35  ;;  %v150_v15 = vld [vmem:[%s1769_s29 + $0x48] sm:$0xff]  ;;  %v149_v31 = vld [vmem:[%s1769_s29 + $0x40] sm:$0xff]  ;;  %v159_v5 = vld [vmem:[%s1769_s29 + $0x90] sm:$0xff]  ;;  %s1627_s13 = scalar_lea.vmem %s1626_s25, 32  ;;  %p1628_p0 = scmp.lt.s32.totalorder %s1270_s14, %s1626_s25 }
  0x20   : > { %v1793_v38 = vand.u32 4294901760, %v268_v28  ;;  %v1797_v40 = vand.u32 4294901760, %v267_v30  ;;  %v266_v42 = vmul.f32 %v234_v32, %v202_v24  ;;  %v1799_v43 = vmul.f32 %v218_v33, %v186_v25  ;;  %v165_v25 = vld [vmem:[%s1769_s29 + $0xc0] sm:$0xff]  ;;  %p1629_p1 = scmp.lt.s32.totalorder %s1627_s13, %s1621_s23 }
  0x21   : > { %v1795_v39 = vand.u32 4294901760, %v252_v29  ;;  %v1801_v44 = vmul.f32 %v233_v34, %v201_v26  ;;  %v1805_v47 = vand.u32 4294901760, %v251_v41  ;;  %v200_v48 = vmax.f32 %v168_v36, 1e-06 }
  0x22   : > { %1334 = vmatprep.subr.mxu0 %v1793_v38  ;;  %v1808_v49 = vsub.f32 %v268_v28, %v1793_v38  ;;  %v184_v50 = vmax.f32 %v152_v37, 1e-06  ;;  %v1812_v52 = vand.u32 4294901760, %v266_v42  ;;  %v1815_v53 = vand.u32 4294901760, %v1799_v43  ;;  %p1630_p2 = por %p1629_p1, %p1628_p0 }
  0x23   : > { %1335 = vmatpush3.msra.mxu0 %v1795_v39  ;;  %v1818_v54 = vand.u32 4294901760, %v1801_v44  ;;  %v1820_v55 = vmul.f32 %v217_v45, %v185_v35  ;;  %v232_v56 = vmul.f32 %v200_v48, %v200_v48  ;;  %v1825_v59 = vsub.f32 %v252_v29, %v1795_v39 }
  0x24   : > { %1336 = vmatprep.subr.mxu0 %v1797_v40  ;;  %v2484_v57 = vand.u32 4294901760, %v1808_v49  ;;  %v216_v58 = vmul.f32 %v184_v50, %v184_v50  ;;  %v199_v61 = vmax.f32 %v167_v46, 1e-06  ;;  %v1832_v62 = vsub.f32 %v267_v30, %v1797_v40  ;;  %p1631_p3 = pnand %p1630_p2, %p1624_p13 }
  0x25   : > { %1337 = vmatpush3.msra.mxu0 %v1805_v47  ;;  %v1829_v60 = vand.u32 4294901760, %v1820_v55  ;;  %v183_v63 = vmax.f32 %v151_v51, 1e-06  ;;  %v1835_v0 = vmul.f32 %v232_v56, %v200_v48  ;;  %v2482_v8 = vand.u32 4294901760, %v1825_v59 }
  0x26   : > { %1338 = vmatprep.subr.mxu0 %v1812_v52  ;;  %v516_v1 = vsub.f32 %v1808_v49, %v2484_v57  ;;  %v1840_v7 = vmul.f32 %v216_v58, %v184_v50  ;;  %v231_v9 = vmul.f32 %v199_v61, %v199_v61  ;;  %v2481_v11 = vand.u32 4294901760, %v1832_v62 }
  0x27   : > { %1339 = vmatpush3.msra.mxu0 %v1815_v53  ;;  %v215_v12 = vmul.f32 %v183_v63, %v183_v63  ;;  %v1846_v13 = vsub.f32 %v251_v41, %v1805_v47  ;;  %v1852_v16 = vand.u32 4294901760, %v1835_v0  ;;  %v404_v20 = vsub.f32 %v1825_v59, %v2482_v8 }
  0x28   : > { %1340 = vmatprep.subr.mxu0 %v1818_v54  ;;  %v517_v18 = vand.u32 4294901760, %v516_v1  ;;  %v1855_v19 = vand.u32 4294901760, %v1840_v7  ;;  %v1861_v21 = vmul.f32 %v231_v9, %v199_v61  ;;  %v523_v22 = vsub.f32 %v1832_v62, %v2481_v11  ;;  %v164_v9 = vld [vmem:[%s1769_s29 + $0xb8] sm:$0xff] }
  0x29   : > { %1341 = vmatpush3.msra.mxu0 %v1829_v60  ;;  %v1866_v23 = vmul.f32 %v215_v12, %v183_v63  ;;  %v2479_v24 = vand.u32 4294901760, %v1846_v13  ;;  %v405_v26 = vand.u32 4294901760, %v404_v20  ;;  %v198_v28 = vmax.f32 %v166_v14, 1e-06  ;;  %v148_v12 = vld [vmem:[%s1769_s29 + $0x38] sm:$0xff] }
  0x2a   : > { %1342 = vmatprep.subr.mxu0 %v1852_v16  ;;  %1372 = vmatprep.subr.mxu1 %v517_v18  ;;  %v1872_v29 = vsub.f32 %v266_v42, %v1812_v52  ;;  %v182_v30 = vmax.f32 %v150_v15, 1e-06  ;;  %v1877_v32 = vand.u32 4294901760, %v1861_v21  ;;  %v524_v33 = vand.u32 4294901760, %v523_v22 }
  0x2b   : > { %1343 = vmatpush3.msra.mxu0 %v1855_v19  ;;  %v1880_v34 = vand.u32 4294901760, %v1866_v23  ;;  %v411_v35 = vsub.f32 %v1846_v13, %v2479_v24  ;;  %1373 = vmatpush3.msra.mxu1 %v405_v26  ;;  %v230_v36 = vmul.f32 %v198_v28, %v198_v28  ;;  %v1888_v42 = vsub.f32 %v1799_v43, %v1815_v53 }
  0x2c   : > { %2560 = vst [vmem:[#allocation9_spill] sm:$0xff] %v1877_v32  ;;  %v2476_v37 = vand.u32 4294901760, %v1872_v29  ;;  %v214_v41 = vmul.f32 %v182_v30, %v182_v30  ;;  %1344 = vmatprep.subr.mxu0 %v1877_v32  ;;  %1374 = vmatprep.subr.mxu1 %v524_v33  ;;  %v197_v46 = vmax.f32 %v165_v25, 1e-06  ;;  %v1893_v48 = vsub.f32 %v1801_v44, %v1818_v54 }
  0x2d   : > { %2561 = vst [vmem:[#allocation10_spill] sm:$0xff] %v1880_v34  ;;  %v412_v45 = vand.u32 4294901760, %v411_v35  ;;  %v181_v50 = vmax.f32 %v149_v31, 1e-06  ;;  %1345 = vmatpush3.msra.mxu0 %v1880_v34  ;;  %v1896_v51 = vmul.f32 %v230_v36, %v198_v28  ;;  %v2475_v58 = vand.u32 4294901760, %v1888_v42  ;;  %v163_v28 = vld [vmem:[%s1769_s29 + $0xb0] sm:$0xff] }
  0x2e   : > { %v530_v43 = vsub.f32 %v1872_v29, %v2476_v37  ;;  %v1901_v56 = vmul.f32 %v214_v41, %v182_v30  ;;  %v229_v61 = vmul.f32 %v197_v46, %v197_v46  ;;  %v2474_v63 = vand.u32 4294901760, %v1893_v48  ;;  %v147_v36 = vld [vmem:[%s1769_s29 + $0x30] sm:$0xff] }
  0x2f   : > { %1375 = vmatpush3.msra.mxu1 %v412_v45  ;;  %v213_v44 = vmul.f32 %v181_v50, %v181_v50  ;;  %v1907_v1 = vsub.f32 %v1820_v55, %v1829_v60  ;;  %v1912_v14 = vand.u32 4294901760, %v1896_v51  ;;  %v418_v20 = vsub.f32 %v1888_v42, %v2475_v58 }
  0x30   : > { %v531_v15 = vand.u32 4294901760, %v530_v43  ;;  %v1915_v18 = vand.u32 4294901760, %v1901_v56  ;;  %v1920_v22 = vmul.f32 %v229_v61, %v197_v46  ;;  %v537_v55 = vsub.f32 %v1893_v48, %v2474_v63  ;;  %v161_v63 = vld [vmem:[%s1769_s29 + $0xa0] sm:$0xff] }
  0x31   : > { %2562 = vst [vmem:[#allocation11_spill] sm:$0xff] %v1912_v14  ;;  %v1925_v25 = vmul.f32 %v213_v44, %v181_v50  ;;  %v2472_v26 = vand.u32 4294901760, %v1907_v1  ;;  %1346 = vmatprep.subr.mxu0 %v1912_v14  ;;  %v419_v30 = vand.u32 4294901760, %v418_v20  ;;  %v196_v31 = vmax.f32 %v164_v9, 1e-06 }
  0x32   : > { %2563 = vst [vmem:[#allocation12_spill] sm:$0xff] %v1915_v18  ;;  %1376 = vmatprep.subr.mxu1 %v531_v15  ;;  %v1932_v33 = vsub.f32 %v1835_v0, %v1852_v16  ;;  %v180_v35 = vmax.f32 %v148_v12, 1e-06  ;;  %1347 = vmatpush3.msra.mxu0 %v1915_v18  ;;  %v1937_v41 = vand.u32 4294901760, %v1920_v22  ;;  %v538_v45 = vand.u32 4294901760, %v537_v55 }
  0x33   : > { %v1940_v46 = vand.u32 4294901760, %v1925_v25  ;;  %v425_v50 = vsub.f32 %v1907_v1, %v2472_v26  ;;  %1377 = vmatpush3.msra.mxu1 %v419_v30  ;;  %v228_v43 = vmul.f32 %v196_v31, %v196_v31  ;;  %v1948_v44 = vsub.f32 %v1840_v7, %v1855_v19 }
  0x34   : > { %2564 = vst [vmem:[#allocation13_spill] sm:$0xff] %v1937_v41  ;;  %v2471_v0 = vand.u32 4294901760, %v1932_v33  ;;  %v212_v61 = vmul.f32 %v180_v35, %v180_v35  ;;  %1348 = vmatprep.subr.mxu0 %v1937_v41  ;;  %1378 = vmatprep.subr.mxu1 %v538_v45  ;;  %v195_v12 = vmax.f32 %v163_v28, 1e-06  ;;  %v1953_v15 = vsub.f32 %v1861_v21, %v1877_v32 }
  0x35   : > { %2565 = vst [vmem:[#allocation14_spill] sm:$0xff] %v1940_v46  ;;  %v426_v9 = vand.u32 4294901760, %v425_v50  ;;  %v179_v20 = vmax.f32 %v147_v36, 1e-06  ;;  %1349 = vmatpush3.msra.mxu0 %v1940_v46  ;;  %v1956_v55 = vmul.f32 %v228_v43, %v196_v31  ;;  %v2478_v45 = vand.u32 4294901760, %v1948_v44  ;;  %v162_v31 = vld [vmem:[%s1769_s29 + $0xa8] sm:$0xff] }
  0x36   : > { %v544_v7 = vsub.f32 %v1932_v33, %v2471_v0  ;;  %v1961_v30 = vmul.f32 %v212_v61, %v180_v35  ;;  %v227_v28 = vmul.f32 %v195_v12, %v195_v12  ;;  %v2477_v50 = vand.u32 4294901760, %v1953_v15  ;;  %v146_v43 = vld [vmem:[%s1769_s29 + $0x28] sm:$0xff] }
  0x37   : > { %1379 = vmatpush3.msra.mxu1 %v426_v9  ;;  %v211_v21 = vmul.f32 %v179_v20, %v179_v20  ;;  %v1967_v36 = vsub.f32 %v1866_v23, %v1880_v34  ;;  %v1972_v10 = vand.u32 4294901760, %v1956_v55  ;;  %v432_v9 = vsub.f32 %v1948_v44, %v2478_v45 }
  0x38   : > { %v545_v35 = vand.u32 4294901760, %v544_v7  ;;  %v1975_v61 = vand.u32 4294901760, %v1961_v30  ;;  %v1980_v0 = vmul.f32 %v227_v28, %v195_v12  ;;  %v551_v23 = vsub.f32 %v1953_v15, %v2477_v50  ;;  %v145_v28 = vld [vmem:[%s1769_s29 + $0x20] sm:$0xff] }
  0x39   : > { %2566 = vst [vmem:[#allocation15_spill] sm:$0xff] %v1972_v10  ;;  %v1985_v26 = vmul.f32 %v211_v21, %v179_v20  ;;  %v2480_v6 = vand.u32 4294901760, %v1967_v36  ;;  %1350 = vmatprep.subr.mxu0 %v1972_v10  ;;  %v433_v7 = vand.u32 4294901760, %v432_v9  ;;  %v194_v58 = vmax.f32 %v162_v31, 1e-06 }
  0x3a   : > { %2567 = vst [vmem:[#allocation16_spill] sm:$0xff] %v1975_v61  ;;  %1380 = vmatprep.subr.mxu1 %v545_v35  ;;  %v1992_v37 = vsub.f32 %v1896_v51, %v1912_v14  ;;  %v178_v12 = vmax.f32 %v146_v43, 1e-06  ;;  %1351 = vmatpush3.msra.mxu0 %v1975_v61  ;;  %v1997_v50 = vand.u32 4294901760, %v1980_v0  ;;  %v552_v20 = vand.u32 4294901760, %v551_v23 }
  0x3b   : > { %v2000_v21 = vand.u32 4294901760, %v1985_v26  ;;  %v439_v35 = vsub.f32 %v1967_v36, %v2480_v6  ;;  %1381 = vmatpush3.msra.mxu1 %v433_v7  ;;  %v226_v31 = vmul.f32 %v194_v58, %v194_v58  ;;  %v2008_v43 = vsub.f32 %v1901_v56, %v1915_v18  ;;  %v157_v18 = vld [vmem:[%s1769_s29 + $0x80] sm:$0xff] }
  0x3c   : > { %2568 = vst [vmem:[#allocation17_spill] sm:$0xff] %v1997_v50  ;;  %v2483_v51 = vand.u32 4294901760, %v1992_v37  ;;  %v210_v9 = vmul.f32 %v178_v12, %v178_v12  ;;  %1352 = vmatprep.subr.mxu0 %v1997_v50  ;;  %1382 = vmatprep.subr.mxu1 %v552_v20  ;;  %v193_v45 = vmax.f32 %v161_v63, 1e-06  ;;  %v2013_v24 = vsub.f32 %v1920_v22, %v1937_v41 }
  0x3d   : > { %2569 = vst [vmem:[#allocation18_spill] sm:$0xff] %v2000_v21  ;;  %v440_v23 = vand.u32 4294901760, %v439_v35  ;;  %v177_v7 = vmax.f32 %v145_v28, 1e-06  ;;  %1353 = vmatpush3.msra.mxu0 %v2000_v21  ;;  %v2016_v6 = vmul.f32 %v226_v31, %v194_v58  ;;  %v2494_v20 = vand.u32 4294901760, %v2008_v43  ;;  %v160_v58 = vld [vmem:[%s1769_s29 + $0x98] sm:$0xff] }
  0x3e   : > { %v558_v56 = vsub.f32 %v1992_v37, %v2483_v51  ;;  %v2021_v11 = vmul.f32 %v210_v9, %v178_v12  ;;  %v225_v63 = vmul.f32 %v193_v45, %v193_v45  ;;  %v2493_v35 = vand.u32 4294901760, %v2013_v24  ;;  %v144_v31 = vld [vmem:[%s1769_s29 + $0x18] sm:$0xff] }
  0x3f   : > { %1383 = vmatpush3.msra.mxu1 %v440_v23  ;;  %v209_v22 = vmul.f32 %v177_v7, %v177_v7  ;;  %v2027_v28 = vsub.f32 %v1925_v25, %v1940_v46  ;;  %v2032_v8 = vand.u32 4294901760, %v2016_v6  ;;  %v446_v23 = vsub.f32 %v2008_v43, %v2494_v20 }
  0x40   : > { %v559_v12 = vand.u32 4294901760, %v558_v56  ;;  %v2035_v9 = vand.u32 4294901760, %v2021_v11  ;;  %v2040_v51 = vmul.f32 %v225_v63, %v193_v45  ;;  %v565_v25 = vsub.f32 %v2013_v24, %v2493_v35  ;;  %v143_v63 = vld [vmem:[%s1769_s29 + $0x10] sm:$0xff] }
  0x41   : > { %2570 = vst [vmem:[#allocation19_spill] sm:$0xff] %v2032_v8  ;;  %v2045_v57 = vmul.f32 %v209_v22, %v177_v7  ;;  %v2497_v2 = vand.u32 4294901760, %v2027_v28  ;;  %1354 = vmatprep.subr.mxu0 %v2032_v8  ;;  %v447_v56 = vand.u32 4294901760, %v446_v23  ;;  %v192_v4 = vmax.f32 %v160_v58, 1e-06 }
  0x42   : > { %2571 = vst [vmem:[#allocation20_spill] sm:$0xff] %v2035_v9  ;;  %1384 = vmatprep.subr.mxu1 %v559_v12  ;;  %v2052_v46 = vsub.f32 %v1956_v55, %v1972_v10  ;;  %v176_v45 = vmax.f32 %v144_v31, 1e-06  ;;  %1355 = vmatpush3.msra.mxu0 %v2035_v9  ;;  %v2057_v35 = vand.u32 4294901760, %v2040_v51  ;;  %v566_v7 = vand.u32 4294901760, %v565_v25 }
  0x43   : > { %v2060_v22 = vand.u32 4294901760, %v2045_v57  ;;  %v453_v12 = vsub.f32 %v2027_v28, %v2497_v2  ;;  %1385 = vmatpush3.msra.mxu1 %v447_v56  ;;  %v224_v58 = vmul.f32 %v192_v4, %v192_v4  ;;  %v2068_v31 = vsub.f32 %v1961_v30, %v1975_v61 }
  0x44   : > { %2572 = vst [vmem:[#allocation21_spill] sm:$0xff] %v2057_v35  ;;  %v2502_v55 = vand.u32 4294901760, %v2052_v46  ;;  %v208_v23 = vmul.f32 %v176_v45, %v176_v45  ;;  %1356 = vmatprep.subr.mxu0 %v2057_v35  ;;  %1386 = vmatprep.subr.mxu1 %v566_v7  ;;  %v191_v20 = vmax.f32 %v159_v5, 1e-06  ;;  %v2073_v10 = vsub.f32 %v1980_v0, %v1997_v50 }
  0x45   : > { %2573 = vst [vmem:[#allocation22_spill] sm:$0xff] %v2060_v22  ;;  %v454_v25 = vand.u32 4294901760, %v453_v12  ;;  %v175_v56 = vmax.f32 %v143_v63, 1e-06  ;;  %1357 = vmatpush3.msra.mxu0 %v2060_v22  ;;  %v2076_v2 = vmul.f32 %v224_v58, %v192_v4  ;;  %v2515_v7 = vand.u32 4294901760, %v2068_v31  ;;  %v158_v4 = vld [vmem:[%s1769_s29 + $0x88] sm:$0xff] }
  0x46   : > { %v572_v30 = vsub.f32 %v2052_v46, %v2502_v55  ;;  %v2081_v61 = vmul.f32 %v208_v23, %v176_v45  ;;  %v223_v5 = vmul.f32 %v191_v20, %v191_v20  ;;  %v2516_v12 = vand.u32 4294901760, %v2073_v10  ;;  %v142_v58 = vld [vmem:[%s1769_s29 + $0x8] sm:$0xff] }
  0x47   : > { %1387 = vmatpush3.msra.mxu1 %v454_v25  ;;  %v207_v0 = vmul.f32 %v175_v56, %v175_v56  ;;  %v2087_v63 = vsub.f32 %v1985_v26, %v2000_v21  ;;  %v2092_v50 = vand.u32 4294901760, %v2076_v2  ;;  %v460_v25 = vsub.f32 %v2068_v31, %v2515_v7  ;;  %v141_v7 = vld [vmem:[%s1769_s29] sm:$0xff] }
  0x48   : > { %v573_v45 = vand.u32 4294901760, %v572_v30  ;;  %v2095_v23 = vand.u32 4294901760, %v2081_v61  ;;  %v255_v55 = vmul.f32 %v223_v5, %v191_v20  ;;  %v579_v26 = vsub.f32 %v2073_v10, %v2516_v12 }
  0x49   : > { %2574 = vst [vmem:[#allocation23_spill] sm:$0xff] %v2087_v63  ;;  %v239_v21 = vmul.f32 %v207_v0, %v175_v56  ;;  %v2519_v41 = vand.u32 4294901760, %v2087_v63  ;;  %1358 = vmatprep.subr.mxu0 %v2092_v50  ;;  %v461_v30 = vand.u32 4294901760, %v460_v25  ;;  %v190_v14 = vmax.f32 %v158_v4, 1e-06 }
  0x4a   : > { %1388 = vmatprep.subr.mxu1 %v573_v45  ;;  %v2108_v34 = vsub.f32 %v2016_v6, %v2032_v8  ;;  %v174_v32 = vmax.f32 %v142_v58, 1e-06  ;;  %1359 = vmatpush3.msra.mxu0 %v2095_v23  ;;  %v2112_v20 = vand.u32 4294901760, %v255_v55  ;;  %v580_v5 = vand.u32 4294901760, %v579_v26 }
  0x4b   : > { %v2114_v56 = vand.u32 4294901760, %v239_v21  ;;  %v467_v0 = vsub.f32 %v2087_v63, %v2519_v41  ;;  %1389 = vmatpush3.msra.mxu1 %v461_v30  ;;  %v222_v45 = vmul.f32 %v190_v14, %v190_v14  ;;  %v2122_v6 = vsub.f32 %v2021_v11, %v2035_v9 }
  0x4c   : > { %v2524_v4 = vand.u32 4294901760, %v2108_v34  ;;  %v206_v25 = vmul.f32 %v174_v32, %v174_v32  ;;  %1360 = vmatprep.subr.mxu0 %v2112_v20  ;;  %1390 = vmatprep.subr.mxu1 %v580_v5  ;;  %v189_v26 = vmax.f32 %v157_v18, 1e-06  ;;  %v2127_v12 = vsub.f32 %v2040_v51, %v2057_v35 }
  0x4d   : > { %2575 = vst [vmem:[#allocation24_spill] sm:$0xff] %v2122_v6  ;;  %v468_v58 = vand.u32 4294901760, %v467_v0  ;;  %v173_v8 = vmax.f32 %v141_v7, 1e-06  ;;  %1361 = vmatpush3.msra.mxu0 %v2114_v56  ;;  %v254_v30 = vmul.f32 %v222_v45, %v190_v14  ;;  %v2527_v11 = vand.u32 4294901760, %v2122_v6 }
  0x4e   : > { %2576 = vst [vmem:[#allocation25_spill] sm:$0xff] %v2127_v12  ;;  %v586_v41 = vsub.f32 %v2108_v34, %v2524_v4  ;;  %v238_v63 = vmul.f32 %v206_v25, %v174_v32  ;;  %v221_v9 = vmul.f32 %v189_v26, %v189_v26  ;;  %v2530_v5 = vand.u32 4294901760, %v2127_v12 }
  0x4f   : > { %1391 = vmatpush3.msra.mxu1 %v468_v58  ;;  %v205_v18 = vmul.f32 %v173_v8, %v173_v8  ;;  %v2137_v51 = vsub.f32 %v2045_v57, %v2060_v22  ;;  %v2139_v7 = vand.u32 4294901760, %v254_v30  ;;  %v474_v32 = vsub.f32 %v2122_v6, %v2527_v11 }
  0x50   : > { %v587_v0 = vand.u32 4294901760, %v586_v41  ;;  %v2141_v14 = vand.u32 4294901760, %v238_v63  ;;  %v253_v45 = vmul.f32 %v221_v9, %v189_v26  ;;  %v593_v25 = vsub.f32 %v2127_v12, %v2530_v5 }
  0x51   : > { %v237_v58 = vmul.f32 %v205_v18, %v173_v8  ;;  %v2528_v4 = vand.u32 4294901760, %v2137_v51  ;;  %1362 = vmatprep.subr.mxu0 %v2139_v7  ;;  %v475_v57 = vand.u32 4294901760, %v474_v32  ;;  %v373_v41 = vand.u32 4294901760, %v1782_v17 }
  0x52   : > { %1392 = vmatprep.subr.mxu1 %v587_v0  ;;  %v2154_v22 = vsub.f32 %v2076_v2, %v2092_v50  ;;  %v379_v11 = vand.u32 4294901760, %v1789_v27  ;;  %1363 = vmatpush3.msra.mxu0 %v2141_v14  ;;  %v2158_v9 = vand.u32 4294901760, %v253_v45  ;;  %v594_v26 = vand.u32 4294901760, %v593_v25 }
  0x53   : > { %v2160_v8 = vand.u32 4294901760, %v237_v58  ;;  %v481_v18 = vsub.f32 %v2137_v51, %v2528_v4  ;;  %1393 = vmatpush3.msra.mxu1 %v475_v57  ;;  %374 = vmatprep.mubr.f32.mxu0 %v373_v41  ;;  %v2168_v2 = vsub.f32 %v2081_v61, %v2095_v23  ;;  %v2171_v27 = vsub.f32 %v255_v55, %v2112_v20 }
  0x54   : > { %2577 = vst [vmem:[#allocation26_spill] sm:$0xff] %v2154_v22  ;;  %2578 = vst [vmem:[#allocation27_spill] sm:$0xff] %v2158_v9  ;;  %v2529_v17 = vand.u32 4294901760, %v2154_v22  ;;  %v2174_v0 = vsub.f32 %v239_v21, %v2114_v56  ;;  %1364 = vmatprep.subr.mxu0 %v2158_v9  ;;  %1394 = vmatprep.subr.mxu1 %v594_v26  ;;  %v2178_v25 = vsub.f32 %v254_v30, %v2139_v7 }
  0x55   : > { %2579 = vst [vmem:[#allocation28_spill] sm:$0xff] %v2160_v8  ;;  %v482_v32 = vand.u32 4294901760, %v481_v18  ;;  %v2181_v57 = vsub.f32 %v238_v63, %v2141_v14  ;;  %v2184_v41 = vsub.f32 %v253_v45, %v2158_v9  ;;  %1365 = vmatpush3.msra.mxu0 %v2160_v8  ;;  %v2532_v21 = vand.u32 4294901760, %v2168_v2 }
  0x56   : > { %2580 = vst [vmem:[#allocation29_spill] sm:$0xff] %v2174_v0  ;;  %v600_v61 = vsub.f32 %v2154_v22, %v2529_v17  ;;  %v2531_v55 = vand.u32 4294901760, %v2171_v27  ;;  %v2535_v26 = vand.u32 4294901760, %v2174_v0  ;;  %1410 = vmatprep.subr.mxu0 %v1808_v49  ;;  %v2538_v63 = vand.u32 4294901760, %v2178_v25  ;;  %380 = vmatmul.mubr.f32.vlgmr.msra.gmra.mxu0 %v379_v11 }
  0x57   : > { %2581 = vst [vmem:[#allocation30_spill] sm:$0xff] %v2181_v57  ;;  %1395 = vmatpush3.msra.mxu1 %v482_v32  ;;  %v2539_v30 = vand.u32 4294901760, %v2181_v57  ;;  %v2541_v45 = vand.u32 4294901760, %v2184_v41  ;;  %v2198_v18 = vsub.f32 %v237_v58, %v2160_v8  ;;  %v488_v17 = vsub.f32 %v2168_v2, %v2532_v21  ;;  %1411 = vmatpush3.msra.mxu0 %v1825_v59 }
  0x58   : > { %v601_v4 = vand.u32 4294901760, %v600_v61  ;;  %v607_v32 = vsub.f32 %v2171_v27, %v2531_v55  ;;  %v495_v5 = vsub.f32 %v2174_v0, %v2535_v26  ;;  %v614_v58 = vsub.f32 %v2178_v25, %v2538_v63  ;;  %1412 = vmatprep.subr.mxu0 %v1832_v62 }
  0x59   : > { %v502_v11 = vsub.f32 %v2181_v57, %v2539_v30  ;;  %v621_v61 = vsub.f32 %v2184_v41, %v2541_v45  ;;  %v2540_v55 = vand.u32 4294901760, %v2198_v18  ;;  %v489_v21 = vand.u32 4294901760, %v488_v17  ;;  %1413 = vmatpush3.msra.mxu0 %v1846_v13  ;;  %v272_v17 = vld [vmem:[%s2467_s0 + $0x18] sm:$0x7f]  ;;  %v2588_v45 = vld [vmem:[#allocation13_spill] sm:$0xff] }
  0x5a   : > { %1396 = vmatprep.subr.mxu1 %v601_v4  ;;  %v608_v8 = vand.u32 4294901760, %v607_v32  ;;  %v496_v26 = vand.u32 4294901760, %v495_v5  ;;  %v615_v9 = vand.u32 4294901760, %v614_v58  ;;  %1414 = vmatprep.subr.mxu0 %v1872_v29  ;;  %v2583_v58 = vld [vmem:[#allocation23_spill] sm:$0xff] }
  0x5b   : > { %v509_v63 = vsub.f32 %v2198_v18, %v2540_v55  ;;  %1397 = vmatpush3.msra.mxu1 %v489_v21  ;;  %v503_v30 = vand.u32 4294901760, %v502_v11  ;;  %1415 = vmatpush3.msra.mxu0 %v1888_v42  ;;  %v622_v4 = vand.u32 4294901760, %v621_v61  ;;  %v271_v21 = vld [vmem:[%s2467_s0 + $0x10] sm:$0x7f]  ;;  %v2584_v61 = vld [vmem:[#allocation9_spill] sm:$0xff] }
  0x5c   : > { %1398 = vmatprep.subr.mxu1 %v608_v8  ;;  %1416 = vmatprep.subr.mxu0 %v1893_v48  ;;  %v2236_v8 = vand.u32 4294901760, %v272_v17 }
  0x5d   : > { %1399 = vmatpush3.msra.mxu1 %v496_v26  ;;  %v510_v5 = vand.u32 4294901760, %v509_v63  ;;  %1417 = vmatpush3.msra.mxu0 %v1907_v1  ;;  %v2240_v26 = vand.u32 4294901760, %v271_v21 }
  0x5e   : > { %1400 = vmatprep.subr.mxu1 %v615_v9  ;;  %1418 = vmatprep.subr.mxu0 %v1932_v33  ;;  %2582 = vst [vmem:[#allocation31_spill] sm:$0xff] %v2236_v8  ;;  %v2247_v9 = vsub.f32 %v272_v17, %v2236_v8 }
  0x5f   : > { %1401 = vmatpush3.msra.mxu1 %v503_v30  ;;  %1419 = vmatpush3.msra.mxu0 %v1948_v44  ;;  %v2254_v63 = vsub.f32 %v271_v21, %v2240_v26  ;;  %v2587_v21 = vld [vmem:[#allocation12_spill] sm:$0xff] }
  0x60   : > { %1402 = vmatprep.subr.mxu1 %v622_v4  ;;  %1420 = vmatprep.subr.mxu0 %v1953_v15  ;;  %v2542_v30 = vand.u32 4294901760, %v2247_v9  ;;  %v2585_v4 = vld [vmem:[#allocation10_spill] sm:$0xff] }
  0x61   : > { %1403 = vmatpush3.msra.mxu1 %v510_v5  ;;  %1421 = vmatpush3.msra.mxu0 %v1967_v36  ;;  %v2546_v32 = vand.u32 4294901760, %v2254_v63  ;;  %v2586_v5 = vld [vmem:[#allocation11_spill] sm:$0xff] }
  0x62   : > { %627 = vmatmul.mubr.f32.vlgmr.msra.gmra.mxu1 %v1756_v3  ;;  %1448 = vmatprep.subr.mxu1 %v1793_v38  ;;  %v387_v11 = vsub.f32 %v2247_v9, %v2542_v30  ;;  %v2589_v30 = vld [vmem:[#allocation14_spill] sm:$0xff] }
  0x63   : > { %1449 = vmatpush3.msra.mxu1 %v1795_v39  ;;  %1422 = vmatprep.subr.mxu0 %v1992_v37  ;;  %v393_v17 = vsub.f32 %v2254_v63, %v2546_v32  ;;  %v2591_v32 = vld [vmem:[#allocation16_spill] sm:$0xff] }
  0x64   : > { %1450 = vmatprep.subr.mxu1 %v1797_v40  ;;  %1423 = vmatpush3.msra.mxu0 %v2008_v43  ;;  %v388_v55 = vand.u32 4294901760, %v387_v11  ;;  %v2593_v11 = vld [vmem:[#allocation18_spill] sm:$0xff] }
  0x65   : > { %1451 = vmatpush3.msra.mxu1 %v1805_v47  ;;  %1424 = vmatprep.subr.mxu0 %v2013_v24  ;;  %v394_v3 = vand.u32 4294901760, %v393_v17  ;;  %v2595_v17 = vld [vmem:[#allocation20_spill] sm:$0xff] }
  0x66   : > { %1452 = vmatprep.subr.mxu1 %v1812_v52  ;;  %1425 = vmatpush3.msra.mxu0 %v2027_v28 }
  0x67   : > { %1453 = vmatpush3.msra.mxu1 %v1815_v53  ;;  %1426 = vmatprep.subr.mxu0 %v2052_v46 }
  0x68   : > { %1454 = vmatprep.subr.mxu1 %v1818_v54  ;;  %1427 = vmatpush3.msra.mxu0 %v2068_v31 }
  0x69   : > { %1455 = vmatpush3.msra.mxu1 %v1829_v60  ;;  %1428 = vmatprep.subr.mxu0 %v2073_v10 }
  0x6a   : > { %1456 = vmatprep.subr.mxu1 %v1852_v16  ;;  %1429 = vmatpush3.msra.mxu0 %v2583_v58 }
  0x6b   : > { %1457 = vmatpush3.msra.mxu1 %v1855_v19  ;;  %1430 = vmatprep.subr.mxu0 %v2108_v34 }
  0x6c   : > { %1458 = vmatprep.subr.mxu1 %v2584_v61  ;;  %1431 = vmatpush3.msra.mxu0 %v2122_v6  ;;  %v2590_v6 = vld [vmem:[#allocation15_spill] sm:$0xff] }
  0x6d   : > { %1459 = vmatpush3.msra.mxu1 %v2585_v4  ;;  %1432 = vmatprep.subr.mxu0 %v2127_v12  ;;  %v2592_v12 = vld [vmem:[#allocation17_spill] sm:$0xff] }
  0x6e   : > { %1460 = vmatprep.subr.mxu1 %v2586_v5  ;;  %1433 = vmatpush3.msra.mxu0 %v2137_v51 }
  0x6f   : > { %1461 = vmatpush3.msra.mxu1 %v2587_v21  ;;  %1434 = vmatprep.subr.mxu0 %v2154_v22  ;;  %v2594_v22 = vld [vmem:[#allocation19_spill] sm:$0xff] }
  0x70   : > { %1462 = vmatprep.subr.mxu1 %v2588_v45  ;;  %1435 = vmatpush3.msra.mxu0 %v2168_v2 }
  0x71   : > { %1463 = vmatpush3.msra.mxu1 %v2589_v30  ;;  %1436 = vmatprep.subr.mxu0 %v2171_v27 }
  0x72   : > { %1464 = vmatprep.subr.mxu1 %v2590_v6  ;;  %389 = vmatprep.mubr.f32.mxu0 %v388_v55  ;;  %v2596_v55 = vld [vmem:[#allocation7_spill] sm:$0xff] }
  0x73   : > { %1465 = vmatpush3.msra.mxu1 %v2591_v32  ;;  %1437 = vmatpush3.msra.mxu0 %v2174_v0  ;;  %v2597_v0 = vld [vmem:[#allocation22_spill] sm:$0xff] }
  0x74   : > { %1466 = vmatprep.subr.mxu1 %v2592_v12  ;;  %395 = vmatmul.mubr.f32.gmra.mxu0 %v394_v3  ;;  %v2598_v3 = vld [vmem:[#allocation8_spill] sm:$0xff] }
  0x75   : > { %1467 = vmatpush3.msra.mxu1 %v2593_v11  ;;  %1438 = vmatprep.subr.mxu0 %v2178_v25 }
  0x76   : > { %1468 = vmatprep.subr.mxu1 %v2594_v22  ;;  %1439 = vmatpush3.msra.mxu0 %v2181_v57  ;;  %v2599_v57 = vand.u32 4294901760, %v1808_v49  ;;  %v2603_v49 = vand.u32 4294901760, %v1872_v29  ;;  %v2610_v29 = vand.u32 4294901760, %v2598_v3 }
  0x77   : > { %1469 = vmatpush3.msra.mxu1 %v2595_v17  ;;  %1440 = vmatprep.subr.mxu0 %v2184_v41 }
  0x78   : > { %1470 = vmatprep.subr.mxu1 %v2057_v35  ;;  %1441 = vmatpush3.msra.mxu0 %v2198_v18  ;;  %v2600_v35 = vand.u32 4294901760, %v1825_v59  ;;  %v2604_v59 = vand.u32 4294901760, %v1888_v42  ;;  %v2612_v42 = vand.u32 4294901760, %v1948_v44  ;;  %v2631_v44 = vld [vmem:[#allocation26_spill] sm:$0xff] }
  0x79   : > { %769 = vmatprep.mubr.f32.mxu0 %v2596_v55  ;;  %1471 = vmatpush3.msra.mxu1 %v2597_v0  ;;  %v2601_v0 = vand.u32 4294901760, %v1832_v62  ;;  %v2605_v62 = vld [vmem:[#allocation27_spill] sm:$0xff] }
  0x7a   : > { %632 = vmatprep.mubr.f32.mxu1 %v2236_v8  ;;  %772 = vmatmul.mubr.f32.vlgmr.msra.gmra.mxu0 %v2598_v3  ;;  %v2602_v8 = vand.u32 4294901760, %v1846_v13  ;;  %v2608_v13 = vand.u32 4294901760, %v2596_v55  ;;  %v2615_v55 = vand.u32 4294901760, %v1967_v36  ;;  %v2634_v36 = vand.u32 4294901760, %v2171_v27  ;;  %v2641_v27 = vld [vmem:[#allocation21_spill] sm:$0xff] }
  0x7b   : > { %1472 = vmatprep.subr.mxu1 %v2092_v50  ;;  %1486 = vmatprep.subr.mxu0 %v2599_v57  ;;  %v2609_v57 = vand.u32 4294901760, %v1907_v1  ;;  %v2614_v1 = vand.u32 4294901760, %v2247_v9 }
  0x7c   : > { %634 = vmatmul.mubr.f32.gmra.mxu1 %v2240_v26  ;;  %1487 = vmatpush3.msra.mxu0 %v2600_v35  ;;  %v2606_v35 = vand.u32 4294901760, %v1893_v48  ;;  %v2613_v48 = vand.u32 4294901760, %v1953_v15  ;;  %v2633_v15 = vand.u32 4294901760, %v2168_v2  ;;  %v2640_v2 = vand.u32 4294901760, %v2184_v41 }
  0x7d   : > { %1473 = vmatpush3.msra.mxu1 %v2095_v23  ;;  %1488 = vmatprep.subr.mxu0 %v2601_v0  ;;  %v2607_v0 = vld [vmem:[#allocation28_spill] sm:$0xff] }
  0x7e   : > { %1474 = vmatprep.subr.mxu1 %v2112_v20  ;;  %778 = vmatprep.mubr.f32.mxu0 %v2247_v9  ;;  %v2644_v9 = vld [vmem:[#allocation22_spill] sm:$0xff] }
  0x7f   : > { %1475 = vmatpush3.msra.mxu1 %v2114_v56  ;;  %1489 = vmatpush3.msra.mxu0 %v2602_v8  ;;  %v2611_v8 = vand.u32 4294901760, %v1932_v33  ;;  %v2617_v33 = vand.u32 4294901760, %v2254_v63 }
  0x80   : > { %1476 = vmatprep.subr.mxu1 %v2139_v7  ;;  %781 = vmatmul.mubr.f32.gmra.mxu0 %v2254_v63 }
  0x81   : > { %1490 = vmatprep.subr.mxu0 %v2603_v49  ;;  %1477 = vmatpush3.msra.mxu1 %v2141_v14 }
  0x82   : > { %1491 = vmatpush3.msra.mxu0 %v2604_v59  ;;  %1478 = vmatprep.subr.mxu1 %v2605_v62 }
  0x83   : > { %1492 = vmatprep.subr.mxu0 %v2606_v35  ;;  %1479 = vmatpush3.msra.mxu1 %v2607_v0 }
  0x84   : > { %885 = vmatprep.mubr.f32.mxu1 %v2608_v13  ;;  %1493 = vmatpush3.msra.mxu0 %v2609_v57 }
  0x85   : > { %889 = vmatmul.mubr.f32.vlgmr.msra.gmra.mxu1 %v2610_v29  ;;  %1494 = vmatprep.subr.mxu0 %v2611_v8 }
  0x86   : > { %1524 = vmatprep.subr.mxu1 %v1793_v38  ;;  %1495 = vmatpush3.msra.mxu0 %v2612_v42  ;;  %v2616_v38 = vand.u32 4294901760, %v1992_v37  ;;  %v2621_v37 = vand.u32 4294901760, %v2052_v46  ;;  %v2630_v46 = vand.u32 4294901760, %v2137_v51 }
  0x87   : > { %1525 = vmatpush3.msra.mxu1 %v1795_v39  ;;  %1496 = vmatprep.subr.mxu0 %v2613_v48  ;;  %v2618_v39 = vand.u32 4294901760, %v2008_v43  ;;  %v2635_v43 = vld [vmem:[#allocation29_spill] sm:$0xff] }
  0x88   : > { %1526 = vmatprep.subr.mxu1 %v1797_v40  ;;  %896 = vmatprep.mubr.f32.mxu1 %v2614_v1  ;;  %v2619_v40 = vand.u32 4294901760, %v2013_v24 }
  0x89   : > { %1497 = vmatpush3.msra.mxu0 %v2615_v55  ;;  %1527 = vmatpush3.msra.mxu1 %v1805_v47  ;;  %v2620_v47 = vand.u32 4294901760, %v2027_v28  ;;  %v2636_v28 = vand.u32 4294901760, %v2635_v43 }
  0x8a   : > { %1498 = vmatprep.subr.mxu0 %v2616_v38  ;;  %900 = vmatmul.mubr.f32.gmra.mxu1 %v2617_v33 }
  0x8b   : > { %1528 = vmatprep.subr.mxu1 %v1812_v52  ;;  %1499 = vmatpush3.msra.mxu0 %v2618_v39  ;;  %v2622_v52 = vand.u32 4294901760, %v2068_v31  ;;  %v2637_v31 = vand.u32 4294901760, %v2178_v25  ;;  %v2645_v25 = vld [vmem:[#allocation6_spill] sm:$0xff] }
  0x8c   : > { %1529 = vmatpush3.msra.mxu1 %v1815_v53  ;;  %1500 = vmatprep.subr.mxu0 %v2619_v40  ;;  %v2623_v53 = vand.u32 4294901760, %v2073_v10 }
  0x8d   : > { %1530 = vmatprep.subr.mxu1 %v1818_v54  ;;  %1501 = vmatpush3.msra.mxu0 %v2620_v47  ;;  %v2624_v54 = vand.u32 4294901760, %v2583_v58 }
  0x8e   : > { %1531 = vmatpush3.msra.mxu1 %v1829_v60  ;;  %1502 = vmatprep.subr.mxu0 %v2621_v37  ;;  %v2625_v60 = vand.u32 4294901760, %v2108_v34  ;;  %v2632_v34 = vand.u32 4294901760, %v2631_v44 }
  0x8f   : > { %1532 = vmatprep.subr.mxu1 %v1852_v16  ;;  %1503 = vmatpush3.msra.mxu0 %v2622_v52  ;;  %v2626_v16 = vld [vmem:[#allocation24_spill] sm:$0xff] }
  0x90   : > { %1533 = vmatpush3.msra.mxu1 %v1855_v19  ;;  %1504 = vmatprep.subr.mxu0 %v2623_v53  ;;  %v2627_v24 = vand.u32 4294901760, %v2626_v16  ;;  %v2628_v19 = vld [vmem:[#allocation25_spill] sm:$0xff] }
  0x91   : > { %1534 = vmatprep.subr.mxu1 %v2584_v61  ;;  %1505 = vmatpush3.msra.mxu0 %v2624_v54  ;;  %v2629_v10 = vand.u32 4294901760, %v2628_v19 }
  0x92   : > { %1535 = vmatpush3.msra.mxu1 %v2585_v4  ;;  %1506 = vmatprep.subr.mxu0 %v2625_v60 }
  0x93   : > { %1536 = vmatprep.subr.mxu1 %v2586_v5  ;;  %1507 = vmatpush3.msra.mxu0 %v2627_v24 }
  0x94   : > { %1537 = vmatpush3.msra.mxu1 %v2587_v21  ;;  %1508 = vmatprep.subr.mxu0 %v2629_v10 }
  0x95   : > { %1538 = vmatprep.subr.mxu1 %v2588_v45  ;;  %1509 = vmatpush3.msra.mxu0 %v2630_v46  ;;  %v2643_v45 = vld [vmem:[#allocation5_spill] sm:$0xff] }
  0x96   : > { %1539 = vmatpush3.msra.mxu1 %v2589_v30  ;;  %1510 = vmatprep.subr.mxu0 %v2632_v34 }
  0x97   : > { %1540 = vmatprep.subr.mxu1 %v2590_v6  ;;  %1511 = vmatpush3.msra.mxu0 %v2633_v15  ;;  %v2638_v6 = vld [vmem:[#allocation30_spill] sm:$0xff] }
  0x98   : > { %1541 = vmatpush3.msra.mxu1 %v2591_v32  ;;  %1512 = vmatprep.subr.mxu0 %v2634_v36  ;;  %v2639_v51 = vand.u32 4294901760, %v2638_v6 }
  0x99   : > { %1542 = vmatprep.subr.mxu1 %v2592_v12  ;;  %1513 = vmatpush3.msra.mxu0 %v2636_v28  ;;  %v2642_v12 = vand.u32 4294901760, %v2198_v18 }
  0x9a   : > { %1543 = vmatpush3.msra.mxu1 %v2593_v11  ;;  %1514 = vmatprep.subr.mxu0 %v2637_v31 }
  0x9b   : > { %1544 = vmatprep.subr.mxu1 %v2594_v22  ;;  %1515 = vmatpush3.msra.mxu0 %v2639_v51  ;;  %v2646_v22 = vld [vmem:[#allocation31_spill] sm:$0xff] }
  0x9c   : > { %1545 = vmatpush3.msra.mxu1 %v2595_v17  ;;  %1516 = vmatprep.subr.mxu0 %v2640_v2 }
  0x9d   : > { %1546 = vmatprep.subr.mxu1 %v2641_v27  ;;  %1517 = vmatpush3.msra.mxu0 %v2642_v12 }
  0x9e   : > { %1066 = vmatprep.mubr.f32.mxu0 %v2643_v45  ;;  %1547 = vmatpush3.msra.mxu1 %v2644_v9 }
  0x9f   : > { %1068 = vmatmul.mubr.f32.vlgmr.msra.gmra.mxu0 %v2645_v25  ;;  %1548 = vmatprep.subr.mxu1 %v2092_v50 }
  0xa0   : > { %1073 = vmatprep.mubr.f32.mxu0 %v2646_v22  ;;  %1549 = vmatpush3.msra.mxu1 %v2095_v23 }
  0xa1   : > { %1177 = vmatprep.mubr.f32.mxu1 %v2643_v45  ;;  %1550 = vmatprep.subr.mxu1 %v2112_v20 }
  0xa2   : > { %1551 = vmatpush3.msra.mxu1 %v2114_v56 }
  0xa3   : > { %1075 = vmatmul.mubr.f32.gmra.mxu0 %v2240_v26  ;;  %1552 = vmatprep.subr.mxu1 %v2139_v7 }
  0xa4   : > { %1553 = vmatpush3.msra.mxu1 %v2141_v14 }
  0xa5   : > { %1554 = vmatprep.subr.mxu1 %v2605_v62 }
  0xa6   : > { %1555 = vmatpush3.msra.mxu1 %v2607_v0 }
  0xa7   : > { %1179 = vmatmul.mubr.f32.vlgmr.msra.gmra.mxu1 %v2645_v25 }
  0xa8   : > { %1184 = vmatprep.mubr.f32.mxu1 %v2646_v22 }
  0xab   : > { %1186 = vmatmul.mubr.f32.gmra.mxu1 %v2240_v26 }
 0x116   : > { %v1366_v50 = vpop.f32.mrf.mxu0 }
 0x118   : > { %v1367_v23 = vpop.f32.mrf.mxu0 }
 0x119   : > { %v1368_v3 = vadd.f32 %v1367_v23, %v1366_v50 }
 0x122   : > { %v1404_v41 = vpop.f32.mrf.mxu1 }
 0x124   : > { %v1405_v63 = vpop.f32.mrf.mxu1 }
 0x125   : > { %v1406_v21 = vadd.f32 %v1405_v63, %v1404_v41 }
 0x127   : > { %v629_v35 = vadd.f32 %v1406_v21, %v1368_v3 }
 0x134   : > { %v1369_v20 = vpop.f32.mrf.mxu0 }
 0x136   : > { %v1370_v56 = vpop.f32.mrf.mxu0 }
 0x137   : > { %v1371_v26 = vadd.f32 %v1370_v56, %v1369_v20 }
 0x13a   : > { %v1442_v18 = vpop.f32.mrf.mxu0 }
 0x13c   : > { %v1407_v7 = vpop.f32.mrf.mxu1  ;;  %v1443_v30 = vpop.f32.mrf.mxu0 }
 0x13d   : > { %v1444_v49 = vadd.f32 %v1443_v30, %v1442_v18 }
 0x13e   : > { %v1408_v14 = vpop.f32.mrf.mxu1 }
 0x13f   : > { %v1409_v59 = vadd.f32 %v1408_v14, %v1407_v7  ;;  %v774_v57 = vadd.f32 %v1444_v49, %v629_v35 }
 0x140   : > { %v1445_v32 = vpop.f32.mrf.mxu0 }
 0x141   : > { %v636_v29 = vadd.f32 %v1409_v59, %v1371_v26 }
 0x142   : > { %v1446_v61 = vpop.f32.mrf.mxu0 }
 0x143   : > { %v1447_v8 = vadd.f32 %v1446_v61, %v1445_v32 }
 0x145   : > { %v1480_v58 = vpop.f32.mrf.mxu1  ;;  %v783_v39 = vadd.f32 %v1447_v8, %v636_v29 }
 0x147   : > { %v1481_v4 = vpop.f32.mrf.mxu1 }
 0x148   : > { %v1482_v0 = vadd.f32 %v1481_v4, %v1480_v58 }
 0x14a   : > { %v1483_v17 = vpop.f32.mrf.mxu1  ;;  %v891_v55 = vadd.f32 %v1482_v0, %v774_v57 }
 0x14c   : > { %v1484_v13 = vpop.f32.mrf.mxu1 }
 0x14d   : > { %v1485_v38 = vadd.f32 %v1484_v13, %v1483_v17 }
 0x14f   : > { %v902_v53 = vadd.f32 %v1485_v38, %v783_v39 }
 0x15f   : > { %v1518_v5 = vpop.f32.mrf.mxu0 }
 0x161   : > { %v1519_v11 = vpop.f32.mrf.mxu0 }
 0x162   : > { %v1520_v42 = vadd.f32 %v1519_v11, %v1518_v5 }
 0x163   : > { %v1521_v62 = vpop.f32.mrf.mxu0 }
 0x164   : > { %v1070_v40 = vadd.f32 %v1520_v42, %v891_v55 }
 0x165   : > { %v1522_v48 = vpop.f32.mrf.mxu0 }
 0x166   : > { %v1523_v47 = vadd.f32 %v1522_v48, %v1521_v62 }
 0x167   : > { %v1556_v1 = vpop.f32.mrf.mxu1 }
 0x168   : > { %v1077_v16 = vadd.f32 %v1523_v47, %v902_v53 }
 0x169   : > { %v1557_v33 = vpop.f32.mrf.mxu1 }
 0x16a   : > { %v1558_v37 = vadd.f32 %v1557_v33, %v1556_v1 }
 0x16b   : > { %v1559_v52 = vpop.f32.mrf.mxu1 }
 0x16c   : > { %v1181_v54 = vadd.f32 %v1558_v37, %v1070_v40 }
 0x16d   : > { %v1560_v60 = vpop.f32.mrf.mxu1 }
 0x16e   : > { %1601 = vlog2.f32 %v1181_v54  ;;  %v1561_v24 = vadd.f32 %v1560_v60, %v1559_v52 }
 0x170   : > { %v1188_v19 = vadd.f32 %v1561_v24, %v1077_v16 }
 0x172   : > { %1603 = vlog2.f32 %v1188_v19 }
 0x17b   : > { %v1602_v10 = vpop.eup %1601 }
 0x17c   : > { %v1192_v46 = vmul.f32 0.6931472, %v1602_v10 }
 0x17e   : > { %v1195_v44 = vmul.f32 0.33333334, %v1192_v46 }
 0x17f   : > { %v1604_v34 = vpop.eup %1603 }
 0x180   : > { %v1197_v15 = vmul.f32 1.442695, %v1195_v44  ;;  %v1194_v36 = vmul.f32 0.6931472, %v1604_v34 }
 0x182   : > { %1605 = vpow2.f32 %v1197_v15  ;;  %v1196_v43 = vmul.f32 0.33333334, %v1194_v36 }
 0x184   : > { %v1199_v28 = vmul.f32 1.442695, %v1196_v43 }
 0x186   : > { %1607 = vpow2.f32 %v1199_v28 }
 0x18f   : > { %v1606_v31 = vpop.eup %1605 }
 0x190   : > { %v1201_v6 = vmul.f32 %v1606_v31, %v1606_v31 }
 0x192   : > { %v1204_v51 = vsel %vm1203_vm0, %v1201_v6, 0.0 }
 0x193   : > { %v1608_v2 = vpop.eup %1607  ;;  %1205 = vadd.xlane.f32.xlu0 %v1204_v51 }
 0x194   : > { %v1202_v27 = vmul.f32 %v1608_v2, %v1608_v2 }
 0x196   : > { %v1208_v12 = vsel %vm1207_vm1, %v1202_v27, 0.0 }
 0x197   : > { %1209 = vadd.xlane.f32.xlu0 %v1208_v12 }
 0x21c   : > { %v1206_v45 = vpop.xlane.xlu0 %1205 }
 0x21d   : > { %1609 = vrsqrt.f32 %v1206_v45  ;;  %vm1213_vm2 = vcmp.eq.f32.partialorder %v1206_v45, inf  ;;  %v1216_v50 = vand.u32 2147483648, %v1206_v45  ;;  %vm1215_vm3 = vcmp.eq.f32.partialorder %v1206_v45, 0.0 }
 0x220   : > { %v1210_v9 = vpop.xlane.xlu0 %1209 }
 0x221   : > { %1611 = vrsqrt.f32 %v1210_v9  ;;  %vm1220_vm4 = vcmp.eq.f32.partialorder %v1210_v9, inf  ;;  %v1223_v63 = vand.u32 2147483648, %v1210_v9  ;;  %vm1222_vm5 = vcmp.eq.f32.partialorder %v1210_v9, 0.0 }
 0x22a   : > { %v1610_v25 = vpop.eup %1609 }
 0x22b   : > { %v1212_v22 = vmul.f32 %v1610_v25, %v1206_v45 }
 0x22d   : > { %v1214_v23 = vsel %vm1213_vm2, %v1206_v45, %v1212_v22 }
 0x22e   : > { %v1612_v20 = vpop.eup %1611  ;;  %v1217_v56 = vsel %vm1215_vm3, %v1216_v50, %v1214_v23 }
 0x22f   : > { %v1225_v41 = vadd.f32 1e-06, %v1217_v56  ;;  %v1219_v18 = vmul.f32 %v1612_v20, %v1210_v9 }
 0x231   : > { %1613 = vrcp.f32 %v1225_v41  ;;  %v1221_v7 = vsel %vm1220_vm4, %v1210_v9, %v1219_v18 }
 0x232   : > { %v1224_v30 = vsel %vm1222_vm5, %v1223_v63, %v1221_v7 }
 0x233   : > { %v1226_v14 = vadd.f32 1e-06, %v1224_v30 }
 0x235   : > { %1615 = vrcp.f32 %v1226_v14 }
 0x23e   : > { %v1614_v32 = vpop.eup %1613 }
 0x23f   : > { %v1229_v58 = vmul.f32 %v1614_v32, %v1606_v31 }
 0x241   : > { %v1231_v5 = vsel %vm1203_vm0, %v1229_v58, 0.0 }
 0x242   : > { %v1616_v61 = vpop.eup %1615 }
 0x243   : > { %v1230_v4 = vmul.f32 %v1616_v61, %v1608_v2 }
 0x245   : > { %v1232_v21 = vsel %vm1207_vm1, %v1230_v4, 0.0 }
 0x246   : > { %v1233_v11 = vadd.f32 %v1232_v21, %v1231_v5 }
 0x248   : > { %v1234_v17 = vrot.slane %v1233_v11, 4 }
 0x24a   : > { %v1235_v3 = vadd.f32 %v1234_v17, %v1233_v11 }
 0x24c   : > { %v1236_v26 = vrot.slane %v1235_v3, 2 }
 0x24e   : > { %v1237_v49 = vadd.f32 %v1236_v26, %v1235_v3 }
 0x250   : > { %v1238_v59 = vrot.slane %v1237_v49, 1 }
 0x252   : > { %v1239_v62 = vadd.f32 %v1238_v59, %v1237_v49 }
 0x254   : > { %v1240_v35 = vmul.f32 %v1239_v62, %v1239_v62 }
 0x256   : > { %v1241_v0 = vsel %vm1203_vm0, %v1240_v35, 0.0 }
 0x257   : > { %1242 = vadd.xlane.f32.xlu1 %v1241_v0 }
 0x2e0   : > { %v1243_v13 = vpop.xlane.xlu1 %1242 }
 0x2e1   : > { %1617 = vrsqrt.f32 %v1243_v13  ;;  %vm1246_vm6 = vcmp.eq.f32.partialorder %v1243_v13, inf  ;;  %v1249_v8 = vand.u32 2147483648, %v1243_v13  ;;  %vm1248_vm7 = vcmp.eq.f32.partialorder %v1243_v13, 0.0 }
 0x2ee   : > { %v1618_v57 = vpop.eup %1617 }
 0x2ef   : > { %v1245_v29 = vmul.f32 %v1618_v57, %v1243_v13 }
 0x2f1   : > { %v1247_v42 = vsel %vm1246_vm6, %v1243_v13, %v1245_v29 }
 0x2f2   : > { %v1250_v48 = vsel %vm1248_vm7, %v1249_v8, %v1247_v42 }
 0x2f3   : > { %v1251_v1 = vadd.f32 1e-06, %v1250_v48 }
 0x2f5   : > { %1619 = vrcp.f32 %v1251_v1 }
 0x302   : > { %v1620_v55 = vpop.eup %1619 }
 0x303   : > { %v1253_v38 = vmul.f32 %v1620_v55, %v1239_v62 }
 0x305   : > { %1255 = vst.msk [vmem:[%s135_s8] sm:$0x1] %vm1254_vm8, %v1253_v38 }
 0x306   : > { %1634 = shalt.err (!%p1631_p3)
}
 0x307   : > { %s1635_s26 = scalar_lea.hbm %s1267_s21, 16  ;;  %s1639_s29 = scalar_lea.hbm %s2469_s2, 32 }
 0x308   : > { %p1636_p4 = scmp.ne.s32.totalorder %s1267_s21, %s1635_s26  ;;  %p1640_p9 = scmp.lt.s32.totalorder %s1267_s21, %s2469_s2 }
 0x309   : > { %p1641_p10 = scmp.lt.s32.totalorder %s1639_s29, %s1635_s26 }
 0x30a   : > { %p1637_p7 = pnand %p1636_p4, %p1737_p5 }
 0x30b   : > { %p1642_p11 = por %p1641_p10, %p1640_p9 }
 0x30c   : > { %p1638_p8 = pneg %p1637_p7 }
 0x30e   : > { %p1643_p12 = pnand %p1642_p11, %p1638_p8 }
 0x310   : > { %1646 = shalt.err (!%p1643_p12)
}
 0x311   : > { %1562 = dma.vmem_to_hbm [thread:$0]  (%p1737_p5), %s1270_s14, 16, %s1267_s21, %s1257_s22  }
 0x312 PF: > { %p1568_p13 = scmp.ge.s32.totalorder %s1681_s12, 2  ;;  %s1281_s4 = sand.u32 1, %s1669_s9  }
 0x313   : > { %s1282_s5 = scalar_lea.sflag [#allocation3], %s1281_s4 }
 0x314   : > { %p1565_p0 = pnand %p1568_p13, %p1741_p6 }
 0x316   : > { %p1566_p1 = pneg %p1565_p0 }
 0x318   : > { %1664 = dma.done.wait (%p1566_p1), %s1282_s5, 16  }
 0x319   : > { %1666 = vsyncadd (%p1566_p1), %s1282_s5, 4294967280  ;;  %p12_p2 = scmp.ge.s32.totalorder %s1724_s15, 4   ;;  %s2647_s9 = smov %s1673_s10 }
 0x31a   : > { %s2648_s10 = smov %s1677_s11  ;;  %s2649_s11 = smov %s1735_s18 }
 0x31b   : > { %s2650_s12 = smov %s1724_s15  ;;  %14 = sbr.rel (!%p12_p2) target bundleno = 3 (0x3), region = 63 }
 0x320   :  { %1286 = vsyncpa [#allocation3], 1 }
 0x321   :  { %1288 = vsyncpa [#allocation3 + $0x1], 1 }

</bundles_post_ra>
